<compile_context>
chip_gen: v7x
topology: tpu7x:2x2x1
jax: 0.10.0
libtpu: 0.0.40
codegen_flags: <defaults>
</compile_context>

<pallas_src>
import jax
import jax.numpy as jnp
from jax.experimental import pallas as pl
from jax.experimental.pallas import tpu as pltpu


def _round_up(x: int, m: int) -> int:
    return ((x + m - 1) // m) * m


def _concat_pooler_kernel(x_ref, o_ref):
    # x_ref: (Bt, S, H) tile of last_hidden_state.
    # o_ref: (Bt, 3*H) tile (H % 128 == 0 -> lane-aligned slices) or
    #        (Bt, 3, H) tile (lane-offset-0 stores).  Order: [CLS | mean | max].
    S = x_ref.shape[1]

    cls_vec = x_ref[:, 0, :]                             # (Bt, H), exact in input dtype
    x = x_ref[...]                                       # single whole-tile load
    max_vec = jnp.max(x, axis=1)                         # exact in input dtype
    sum_f32 = jnp.sum(x, axis=1, dtype=jnp.float32)      # f32 accumulation for the mean
    mean_vec = sum_f32 * jnp.float32(1.0 / S)            # (Bt, H), f32

    if len(o_ref.shape) == 3:
        # (Bt, 3, H): every store starts at lane offset 0 (unmasked full-width vst).
        o_ref[:, 0, :] = cls_vec.astype(o_ref.dtype)
        o_ref[:, 1, :] = mean_vec.astype(o_ref.dtype)
        o_ref[:, 2, :] = max_vec.astype(o_ref.dtype)
    else:
        # (Bt, 3*H) with H % 128 == 0: slice starts H, 2H are lane-aligned.
        H = x_ref.shape[2]
        o_ref[:, 0 * H:1 * H] = cls_vec.astype(o_ref.dtype)
        o_ref[:, 1 * H:2 * H] = mean_vec.astype(o_ref.dtype)
        o_ref[:, 2 * H:3 * H] = max_vec.astype(o_ref.dtype)


def concat_pooler(last_hidden_state: jax.Array) -> jax.Array:
    """Concatenation of [CLS, mean, max] pooling over the sequence axis.

    Args:
        last_hidden_state: (B, S, H) array (e.g. BERT last_hidden_state).

    Returns:
        (B, 3*H) array, same dtype as the input.
    """
    B, S, H = last_hidden_state.shape
    x = last_hidden_state
    dtype = x.dtype
    itemsize = jnp.dtype(dtype).itemsize

    # Native sublane packing for the dtype: 8 (f32), 16 (bf16/f16), 32 (int8/fp8).
    pack = max(8, 32 // itemsize)

    # VMEM budget from the actual chip (v5e/v6e: 128 MiB, v7x: 64 MiB per TC),
    # leaving ~20% headroom for Mosaic internal scratch and pipeline buffers.
    try:
        vmem_capacity = int(pltpu.get_tpu_info().vmem_capacity_bytes)
    except Exception:
        vmem_capacity = 64 << 20
    budget = int(vmem_capacity * 0.8)

    # Per batch-row bytes: one input row plus the (sublane-padded) output row.
    per_row_bytes = (S * H + 8 * H) * itemsize

    if B <= pack:
        Bt = B
    else:
        # Largest packing-aligned tile that fits double-buffered in the budget...
        bt_fit = (budget // (2 * per_row_bytes) // pack) * pack
        # ...but capped so there are always >= 2 grid steps: with a single step
        # only one of v7x's two TensorCores would stream HBM.
        bt_two = _round_up(pl.cdiv(B, 2), pack)
        Bt = max(pack, min(bt_fit, bt_two))
    # TODO(synk): for very long sequences where even Bt == pack overflows the
    # budget (S*H per row approaching tens of MiB on v7x), add an inner
    # "arbitrary" grid axis over S-chunks with f32 running-sum and input-dtype
    # running-max scratch (init on chunk 0, finalize via pl.when) instead of
    # shrinking Bt below the sublane tile.

    grid = (pl.cdiv(B, Bt),)  # ragged last block handled by Pallas (no jnp.pad)

    flat_out = (H % 128) == 0
    if flat_out:
        out_shape = jax.ShapeDtypeStruct((B, 3 * H), dtype)
        out_spec = pl.BlockSpec((Bt, 3 * H), lambda b: (b, 0))
        out_tile_bytes = Bt * 3 * H * itemsize
    else:
        out_shape = jax.ShapeDtypeStruct((B, 3, H), dtype)
        out_spec = pl.BlockSpec((Bt, 3, H), lambda b: (b, 0, 0))
        out_tile_bytes = Bt * 8 * H * itemsize  # sublane-padded 3 -> 8

    in_tile_bytes = Bt * S * H * itemsize
    vmem_limit = int(min(max(2 * (in_tile_bytes + out_tile_bytes) + (4 << 20),
                             16 << 20),
                         budget))

    cost = pl.CostEstimate(
        flops=2 * B * S * H,                                   # sum + max over S
        bytes_accessed=(B * S * H + B * 3 * H) * itemsize,     # HBM in + out
        transcendentals=0,
    )

    out = pl.pallas_call(
        _concat_pooler_kernel,
        out_shape=out_shape,
        grid_spec=pl.GridSpec(
            grid=grid,
            in_specs=[pl.BlockSpec((Bt, S, H), lambda b: (b, 0, 0))],
            out_specs=out_spec,
        ),
        compiler_params=pltpu.CompilerParams(
            dimension_semantics=("parallel",),
            vmem_limit_bytes=vmem_limit,
        ),
        cost_estimate=cost,
    )(x)

    if not flat_out:
        out = out.reshape(B, 3 * H)  # free row-major reshape
    return out


def _reference(last_hidden_state: jax.Array) -> jax.Array:
    x = last_hidden_state
    cls_vec = x[:, 0, :]
    mean_vec = jnp.mean(x.astype(jnp.float32), axis=1).astype(x.dtype)
    max_vec = jnp.max(x, axis=1)
    return jnp.concatenate([cls_vec, mean_vec, max_vec], axis=-1)


if __name__ == "__main__":
    key = jax.random.PRNGKey(0)

    # Small canonical shape: exercises the (B, 3, H) lane-offset-0 output path
    # (H = 32 is not a multiple of 128) and the B <= pack single-step grid.
    B, S, H = 2, 8, 32
    last_hidden_state = jax.random.normal(key, (B, S, H), dtype=jnp.float32)

    out = concat_pooler(last_hidden_state)
    out = jax.block_until_ready(out)
    ref = _reference(last_hidden_state)
    assert out.shape == (B, 3 * H), out.shape
    assert out.dtype == last_hidden_state.dtype, out.dtype
    assert jnp.allclose(out, ref, atol=1e-5, rtol=1e-5), "mismatch vs reference (f32)"

    # Second shape: ragged batch (B % Bt != 0, no padding copy), bf16 sublane
    # packing (Bt multiple of 16), flat lane-aligned output path (H = 128), and
    # >= 2 parallel grid steps.
    key2 = jax.random.PRNGKey(0)
    B2, S2, H2 = 20, 16, 128
    x2 = jax.random.normal(key2, (B2, S2, H2), dtype=jnp.bfloat16)

    out2 = concat_pooler(x2)
    out2 = jax.block_until_ready(out2)
    ref2 = _reference(x2)
    assert out2.shape == (B2, 3 * H2), out2.shape
    assert out2.dtype == x2.dtype, out2.dtype
    assert jnp.allclose(out2.astype(jnp.float32), ref2.astype(jnp.float32),
                        atol=1e-2, rtol=1e-2), "mismatch vs reference (bf16)"

    print("KERNEL_OK")
</pallas_src>

<mosaic_0001>
module attributes {stable_mosaic.version = 11 : i64} {
  func.func @_concat_pooler_kernel(%arg0: i32, %arg1: memref<2x8x32xf32, #tpu.memory_space<vmem>>, %arg2: memref<2x3x32xf32, #tpu.memory_space<vmem>>) attributes {dimension_semantics = [#tpu.dimension_semantics<parallel>], iteration_bounds = array<i64: 1>, scalar_prefetch = 0 : i64, scratch_operands = 0 : i64, tpu.core_type = #tpu.core_type<tc>, window_params = [{transform_indices = @transform_0, window_bounds = array<i64: 2, 8, 32>}, {transform_indices = @transform_1, window_bounds = array<i64: 2, 3, 32>}]} {
    %c0 = arith.constant 0 : index
    %c0_0 = arith.constant 0 : index
    %c0_1 = arith.constant 0 : index
    %0 = vector.load %arg1[%c0, %c0_0, %c0_1] : memref<2x8x32xf32, #tpu.memory_space<vmem>>, vector<2x1x32xf32>
    %1 = vector.shape_cast %0 : vector<2x1x32xf32> to vector<2x32xf32>
    %c0_2 = arith.constant 0 : index
    %c0_3 = arith.constant 0 : index
    %c0_4 = arith.constant 0 : index
    %2 = vector.load %arg1[%c0_2, %c0_3, %c0_4] : memref<2x8x32xf32, #tpu.memory_space<vmem>>, vector<2x8x32xf32>
    %cst = arith.constant dense<0xFF800000> : vector<2x32xf32>
    %3 = vector.multi_reduction <maximumf>, %2, %cst [1] : vector<2x8x32xf32> to vector<2x32xf32>
    %cst_5 = arith.constant dense<0.000000e+00> : vector<2x32xf32>
    %4 = vector.multi_reduction <add>, %2, %cst_5 [1] : vector<2x8x32xf32> to vector<2x32xf32>
    %cst_6 = arith.constant 1.250000e-01 : f32
    %5 = vector.broadcast %cst_6 : f32 to vector<2x32xf32>
    %6 = arith.mulf %4, %5 : vector<2x32xf32>
    %c0_7 = arith.constant 0 : index
    %c0_8 = arith.constant 0 : index
    %c0_9 = arith.constant 0 : index
    %7 = vector.load %arg2[%c0_7, %c0_8, %c0_9] : memref<2x3x32xf32, #tpu.memory_space<vmem>>, vector<2x1x32xf32>
    %8 = vector.shape_cast %7 : vector<2x1x32xf32> to vector<2x32xf32>
    %9 = vector.shape_cast %1 : vector<2x32xf32> to vector<2x1x32xf32>
    tpu.vector_store %arg2[%c0_7, %c0_8, %c0_9], %9 {strides = array<i32>} : memref<2x3x32xf32, #tpu.memory_space<vmem>>, vector<2x1x32xf32>,
    %c0_10 = arith.constant 0 : index
    %c1 = arith.constant 1 : index
    %c0_11 = arith.constant 0 : index
    %10 = vector.load %arg2[%c0_10, %c1, %c0_11] : memref<2x3x32xf32, #tpu.memory_space<vmem>>, vector<2x1x32xf32>
    %11 = vector.shape_cast %10 : vector<2x1x32xf32> to vector<2x32xf32>
    %12 = vector.shape_cast %6 : vector<2x32xf32> to vector<2x1x32xf32>
    tpu.vector_store %arg2[%c0_10, %c1, %c0_11], %12 {strides = array<i32>} : memref<2x3x32xf32, #tpu.memory_space<vmem>>, vector<2x1x32xf32>,
    %c0_12 = arith.constant 0 : index
    %c2 = arith.constant 2 : index
    %c0_13 = arith.constant 0 : index
    %13 = vector.load %arg2[%c0_12, %c2, %c0_13] : memref<2x3x32xf32, #tpu.memory_space<vmem>>, vector<2x1x32xf32>
    %14 = vector.shape_cast %13 : vector<2x1x32xf32> to vector<2x32xf32>
    %15 = vector.shape_cast %3 : vector<2x32xf32> to vector<2x1x32xf32>
    tpu.vector_store %arg2[%c0_12, %c2, %c0_13], %15 {strides = array<i32>} : memref<2x3x32xf32, #tpu.memory_space<vmem>>, vector<2x1x32xf32>,
    return
  }
  func.func @transform_0(%arg0: i32) -> (i32, i32, i32) {
    %c0_i32 = arith.constant 0 : i32
    %c0_i32_0 = arith.constant 0 : i32
    %c0_i32_1 = arith.constant 0 : i32
    return %arg0, %c0_i32, %c0_i32_0 : i32, i32, i32
  }
  func.func @transform_1(%arg0: i32) -> (i32, i32, i32) {
    %c0_i32 = arith.constant 0 : i32
    %c0_i32_0 = arith.constant 0 : i32
    %c0_i32_1 = arith.constant 0 : i32
    return %arg0, %c0_i32, %c0_i32_0 : i32, i32, i32
  }
}

</mosaic_0001>

<bundles_post_ra>
// kernel: tpu_custom_call.1
= control target key start
LH: loop header
LB: loop body
LE: loop exit
PB: predicated region body
PF: predicated region fallthrough
CT: control target
= control target key end

     0   :  { %6 = vsyncpa [#allocation3], 0  ;;  %s96_s6 = smov [#allocation2]   ;;  %s145_s0 = inlined_call_operand.hbm [shape: f32[2,8,32], index: 0, kind: input, shape index: {}]   ;;  %s146_s1 = inlined_call_operand.vmem [shape: f32[2,3,32], index: 1, kind: output, shape index: {}]  }
   0x1   :  { %s12_s7 = sshll.u32 %s96_s6, 4  ;;  %s72_s10 = scalar_lea.hbm %s145_s0, 256  ;;  %s13_s7 = int_to_ptr.vmem [resolvable:$true] %s12_s7 }
   0x2   :  { %p73_p0 = scmp.ne.s32.totalorder %s145_s0, %s72_s10  ;;  %p76_p1 = scmp.lt.u32.totalorder %s72_s10, %s145_s0 }
   0x4   :  { %p78_p2 = pnand %p76_p1, %p73_p0 }
   0x6   :  { %81 = shalt.err (!%p78_p2)
}
   0x7   :  { %s82_s15 = scalar_lea.vmem %s13_s7, 256  ;;  %p87_p4 = scmp.lt.s32.totalorder %s13_s7, %s13_s7 }
   0x8   :  { %p83_p3 = scmp.ne.s32.totalorder %s13_s7, %s82_s15  ;;  %p88_p5 = scmp.lt.s32.totalorder %s82_s15, %s82_s15 }
   0xa   :  { %p89_p6 = por %p88_p5, %p87_p4 }
   0xc   :  { %p90_p7 = pnand %p89_p6, %p83_p3 }
   0xe   :  { %93 = shalt.err (!%p90_p7)
}
   0xf   :  { %s97_s16 = smov 128   ;;  %s98_s17 = smov 8  }
  0x10   :  { %18 = dma.hbm_to_vmem [thread:$0]  %s145_s0, 256, %s13_s7, [#allocation3], %s97_s16, %s97_s16, %s98_s17  }
  0x11   :  { %94 = dma.done.wait [#allocation3], 256  }
  0x12   :  { %95 = vsyncadd [#allocation3], 4294967040  ;;  %vm57_vm0 = vcmask 253952   ;;  %vm26_vm1 = vcmask 261120   ;;  %v22_v0 = vld [vmem:[#allocation2] sm:$0x1] }
  0x13   :  { %v23_v1 = vld [vmem:[#allocation2 + $0x8] sm:$0x1]  ;;  %v24_v2 = vld [vmem:[#allocation2] sm:$0xff]  ;;  %58 = vst.msk [vmem:[%s146_s1] sm:$0x1] %vm57_vm0, %v22_v0 }
  0x14   :  { %59 = vst.msk [vmem:[%s146_s1 + $0x4] sm:$0x1] %vm57_vm0, %v23_v1  ;;  %v41_v3 = vsel %vm26_vm1, %v24_v2, 0.0  ;;  %v25_v4 = vld [vmem:[#allocation2 + $0x8] sm:$0xff]  ;;  %v27_v5 = vsel %vm26_vm1, %v24_v2, -inf }
  0x15   :  { %v42_v6 = vrot.slane %v41_v3, 4  ;;  %v48_v7 = vsel %vm26_vm1, %v25_v4, 0.0  ;;  %v28_v8 = vrot.slane %v27_v5, 4  ;;  %v34_v9 = vsel %vm26_vm1, %v25_v4, -inf }
  0x16   :  { %v49_v10 = vrot.slane %v48_v7, 4  ;;  %v35_v11 = vrot.slane %v34_v9, 4 }
  0x17   :  { %v43_v12 = vadd.f32 %v42_v6, %v41_v3  ;;  %v29_v13 = vmax.f32 %v27_v5, %v28_v8 }
  0x18   :  { %v50_v14 = vadd.f32 %v49_v10, %v48_v7  ;;  %v36_v15 = vmax.f32 %v34_v9, %v35_v11 }
  0x19   :  { %v44_v16 = vrot.slane %v43_v12, 2  ;;  %v30_v17 = vrot.slane %v29_v13, 2 }
  0x1a   :  { %v51_v18 = vrot.slane %v50_v14, 2  ;;  %v37_v19 = vrot.slane %v36_v15, 2 }
  0x1b   :  { %v45_v20 = vadd.f32 %v44_v16, %v43_v12  ;;  %v31_v21 = vmax.f32 %v29_v13, %v30_v17 }
  0x1c   :  { %v52_v22 = vadd.f32 %v51_v18, %v50_v14  ;;  %v38_v23 = vmax.f32 %v36_v15, %v37_v19 }
  0x1d   :  { %v46_v24 = vrot.slane %v45_v20, 1  ;;  %v32_v25 = vrot.slane %v31_v21, 1 }
  0x1e   :  { %v53_v26 = vrot.slane %v52_v22, 1  ;;  %v39_v27 = vrot.slane %v38_v23, 1 }
  0x1f   :  { %v47_v28 = vadd.f32 %v46_v24, %v45_v20  ;;  %v33_v29 = vmax.f32 %v31_v21, %v32_v25 }
  0x20   :  { %v54_v30 = vadd.f32 %v53_v26, %v52_v22  ;;  %v40_v31 = vmax.f32 %v38_v23, %v39_v27 }
  0x21   :  { %v55_v32 = vmul.f32 0.125, %v47_v28  ;;  %62 = vst.msk [vmem:[%s146_s1 + $0x2] sm:$0x1] %vm57_vm0, %v33_v29 }
  0x22   :  { %v56_v33 = vmul.f32 0.125, %v54_v30  ;;  %63 = vst.msk [vmem:[%s146_s1 + $0x6] sm:$0x1] %vm57_vm0, %v40_v31 }
  0x23   :  { %60 = vst.msk [vmem:[%s146_s1 + $0x1] sm:$0x1] %vm57_vm0, %v55_v32 }
  0x24   :  { %61 = vst.msk [vmem:[%s146_s1 + $0x5] sm:$0x1] %vm57_vm0, %v56_v33 }
  0x25   :  { %68 = vsyncpa [#allocation3], 1 }

</bundles_post_ra>
